<compile_context>
chip_gen: v6e
topology: v6e:2x2x1
jax: 0.10.0
libtpu: 0.0.40
codegen_flags: <defaults>
</compile_context>

<pallas_src>
import jax
import jax.numpy as jnp
from jax.experimental import pallas as pl
from jax.experimental.pallas import tpu as pltpu

SUBLANE = 8  # f32 vreg sublane count


def _round_up(n: int, m: int) -> int:
    return ((n + m - 1) // m) * m


def mlp_kernel(x_ref, w1_ref, b1_ref, w2_ref, b2_ref, w3_ref, b3_ref, out_ref):
    """Fused 3-layer MLP forward for one batch tile, entirely in VMEM.

        h1 = relu(x  @ W1 + b1)    # Dropout = identity (eval mode)
        h2 = relu(h1 @ W2 + b2)    # Dropout = identity (eval mode)
        y  =       h2 @ W3 + b3

    Matmul operands are fed in the weight dtype (bf16 by default, f32 optional);
    accumulation, bias add and ReLU stay f32 (v5e has no bf16 VPU path).
    """
    op_dt = w1_ref.dtype
    x = x_ref[...].astype(op_dt)

    h1 = jnp.dot(x, w1_ref[...], preferred_element_type=jnp.float32) + b1_ref[...]
    h1 = jnp.maximum(h1, 0.0)
    # TODO(synk): training-mode Dropout (stochastic masking via pltpu.prng_*) not
    # implemented; eval-mode identity only.

    h2 = jnp.dot(h1.astype(op_dt), w2_ref[...], preferred_element_type=jnp.float32) + b2_ref[...]
    h2 = jnp.maximum(h2, 0.0)

    y = jnp.dot(h2.astype(op_dt), w3_ref[...], preferred_element_type=jnp.float32) + b3_ref[...]
    out_ref[...] = y.astype(out_ref.dtype)


def prepare_params(params, *, use_bf16_matmul=True):
    """One-time parameter preprocessing (do this ONCE, cache the result).

    params: list of (weight, bias) with weight already [in, out] (transpose of
            PyTorch nn.Linear.weight).
    Casts weights to the matmul operand dtype (bf16 by default) and reshapes biases
    to [1, out] f32 so the per-call forward has zero pad/cast XLA ops.
    """
    op_dt = jnp.bfloat16 if use_bf16_matmul else jnp.float32
    prepared = []
    for w, b in params:
        prepared.append((jnp.asarray(w, op_dt),
                         jnp.asarray(b, jnp.float32).reshape(1, -1)))
    return tuple(prepared)


def simple_neural_network_forward(x, prepared_params, *, batch_tile=4096,
                                  min_pallas_batch=0):
    """Fused Pallas MLP forward.

    x:                [B, in_features] activations (any float dtype; cast to the
                      weight dtype inside the kernel, so no wrapper copy of x).
    prepared_params:  output of prepare_params() (weights [in,out], biases [1,out]).
    batch_tile:       max rows per grid step (capped so the grid has >= 2 steps).
    min_pallas_batch: if B < this, fall back to plain XLA (dispatch overhead
                      dominates for tiny batches). Default 0 = always use Pallas.
    """
    (w1, b1), (w2, b2), (w3, b3) = prepared_params
    B, in_f = x.shape
    h1_f, h2_f, out_f = w1.shape[1], w2.shape[1], w3.shape[1]

    if B < min_pallas_batch:
        # Tiny-batch bypass: let XLA fuse the three tiny matmuls into the graph.
        op_dt = w1.dtype
        h1 = jnp.maximum(jnp.dot(x.astype(op_dt), w1,
                                 preferred_element_type=jnp.float32) + b1, 0.0)
        h2 = jnp.maximum(jnp.dot(h1.astype(op_dt), w2,
                                 preferred_element_type=jnp.float32) + b2, 0.0)
        return jnp.dot(h2.astype(op_dt), w3,
                       preferred_element_type=jnp.float32) + b3

    # Batch tiling: sublane-align, cap at batch_tile, and keep >= 2 grid steps when
    # the batch allows it so v7x's 2 TensorCores both get work.
    B_pad = _round_up(B, SUBLANE)
    tb = min(batch_tile, B_pad)
    if B_pad >= 2 * SUBLANE:
        tb = min(tb, _round_up(-(-B_pad // 2), SUBLANE))
    tb = _round_up(tb, SUBLANE)
    b_p = _round_up(B_pad, tb)

    # Pad ONLY the batch dim, and only if needed (no feature-dim padding, no copy
    # when B already matches).
    x_p = x if b_p == B else jnp.pad(x, ((0, b_p - B), (0, 0)))

    resident = lambda i: (0, 0)  # weights/biases: same block every step -> VMEM-resident

    itemsize_w = jnp.dtype(w1.dtype).itemsize
    flops = 2 * b_p * (in_f * h1_f + h1_f * h2_f + h2_f * out_f)
    bytes_accessed = (
        b_p * in_f * jnp.dtype(x_p.dtype).itemsize          # x read
        + (in_f * h1_f + h1_f * h2_f + h2_f * out_f) * itemsize_w  # weights
        + (h1_f + h2_f + out_f) * 4                          # biases (f32)
        + b_p * out_f * 4                                    # y write (f32)
    )

    y_padded = pl.pallas_call(
        mlp_kernel,
        out_shape=jax.ShapeDtypeStruct((b_p, out_f), jnp.float32),
        grid_spec=pltpu.PrefetchScalarGridSpec(
            num_scalar_prefetch=0,
            grid=(b_p // tb,),
            in_specs=[
                pl.BlockSpec((tb, in_f), lambda i: (i, 0)),   # x tile streamed per step
                pl.BlockSpec((in_f, h1_f), resident),
                pl.BlockSpec((1, h1_f), resident),
                pl.BlockSpec((h1_f, h2_f), resident),
                pl.BlockSpec((1, h2_f), resident),
                pl.BlockSpec((h2_f, out_f), resident),
                pl.BlockSpec((1, out_f), resident),
            ],
            out_specs=pl.BlockSpec((tb, out_f), lambda i: (i, 0)),
        ),
        compiler_params=pltpu.CompilerParams(
            # Batch axis is fully parallel -> v7x's 2 TensorCores shard the grid.
            dimension_semantics=("parallel",),
        ),
        cost_estimate=pl.CostEstimate(
            flops=flops, transcendentals=0, bytes_accessed=bytes_accessed),
    )(x_p, w1, b1, w2, b2, w3, b3)

    return y_padded[:B] if b_p != B else y_padded


def init_linear_params(key, in_features, out_features):
    """Deterministic init mimicking PyTorch nn.Linear (uniform in +/- 1/sqrt(in))."""
    k_w, k_b = jax.random.split(key)
    bound = 1.0 / jnp.sqrt(jnp.float32(in_features))
    # Stored directly as [in, out] (transpose of PyTorch's [out, in]).
    w = jax.random.uniform(k_w, (in_features, out_features), jnp.float32, -bound, bound)
    b = jax.random.uniform(k_b, (1, out_features), jnp.float32, -bound, bound)
    return w, b


def reference_forward(x, params, *, op_dt=jnp.float32):
    """Pure-JAX reference (same operand dtypes / f32 accumulation as the kernel)."""
    (w1, b1), (w2, b2), (w3, b3) = params

    def dense(a, w, b):
        return jnp.dot(a.astype(op_dt), w.astype(op_dt),
                       preferred_element_type=jnp.float32) + b.reshape(1, -1)

    h1 = jnp.maximum(dense(x, w1, b1), 0.0)
    h2 = jnp.maximum(dense(h1, w2, b2), 0.0)
    return dense(h2, w3, b3)


if __name__ == "__main__":
    # SimpleNeuralNetwork(input_size=16, hidden_sizes=[32, 32], output_size=8)
    input_size = 16
    hidden_sizes = [32, 32]
    output_size = 8
    batch = 32  # small demo batch; the >=2-step cap still exercises a 2-step grid

    key = jax.random.PRNGKey(0)
    k_x, k1, k2, k3 = jax.random.split(key, 4)

    x = jax.random.normal(k_x, (batch, input_size), jnp.float32)
    params = [
        init_linear_params(k1, input_size, hidden_sizes[0]),
        init_linear_params(k2, hidden_sizes[0], hidden_sizes[1]),
        init_linear_params(k3, hidden_sizes[1], output_size),
    ]

    # f32-operand path: exact match against the reference.
    prep_f32 = prepare_params(params, use_bf16_matmul=False)
    y = jax.block_until_ready(simple_neural_network_forward(x, prep_f32))
    y_ref = reference_forward(x, params)
    assert y.shape == (batch, output_size)
    assert jnp.allclose(y, y_ref, atol=1e-5, rtol=1e-5), "f32 Pallas kernel mismatch vs reference"

    # Default bf16-operand path (halved weight/operand traffic, full MXU rate on all
    # generations); compared against a bf16-operand reference with loosened tolerance.
    prep_bf16 = prepare_params(params)  # use_bf16_matmul=True by default
    y_bf16 = jax.block_until_ready(simple_neural_network_forward(x, prep_bf16))
    y_bf16_ref = reference_forward(x, params, op_dt=jnp.bfloat16)
    assert jnp.allclose(y_bf16, y_bf16_ref, atol=2e-2, rtol=2e-2), \
        "bf16 Pallas kernel mismatch vs bf16 reference"

    print("KERNEL_OK")
</pallas_src>

<mosaic_0001>
module attributes {stable_mosaic.version = 11 : i64} {
  func.func @mlp_kernel(%arg0: i32, %arg1: memref<16x16xf32, #tpu.memory_space<vmem>>, %arg2: memref<16x32xf32, #tpu.memory_space<vmem>>, %arg3: memref<1x32xf32, #tpu.memory_space<vmem>>, %arg4: memref<32x32xf32, #tpu.memory_space<vmem>>, %arg5: memref<1x32xf32, #tpu.memory_space<vmem>>, %arg6: memref<32x8xf32, #tpu.memory_space<vmem>>, %arg7: memref<1x8xf32, #tpu.memory_space<vmem>>, %arg8: memref<16x8xf32, #tpu.memory_space<vmem>>) attributes {dimension_semantics = [#tpu.dimension_semantics<parallel>], iteration_bounds = array<i64: 2>, scalar_prefetch = 0 : i64, scratch_operands = 0 : i64, tpu.core_type = #tpu.core_type<tc>, window_params = [{transform_indices = @transform_0, window_bounds = array<i64: 16, 16>}, {pipeline_mode = #tpu.pipeline_mode<synchronous>, transform_indices = @transform_1, window_bounds = array<i64: 16, 32>}, {pipeline_mode = #tpu.pipeline_mode<synchronous>, transform_indices = @transform_2, window_bounds = array<i64: 1, 32>}, {pipeline_mode = #tpu.pipeline_mode<synchronous>, transform_indices = @transform_3, window_bounds = array<i64: 32, 32>}, {pipeline_mode = #tpu.pipeline_mode<synchronous>, transform_indices = @transform_4, window_bounds = array<i64: 1, 32>}, {pipeline_mode = #tpu.pipeline_mode<synchronous>, transform_indices = @transform_5, window_bounds = array<i64: 32, 8>}, {pipeline_mode = #tpu.pipeline_mode<synchronous>, transform_indices = @transform_6, window_bounds = array<i64: 1, 8>}, {transform_indices = @transform_7, window_bounds = array<i64: 16, 8>}]} {
    %c0 = arith.constant 0 : index
    %c0_0 = arith.constant 0 : index
    %0 = vector.load %arg1[%c0, %c0_0] : memref<16x16xf32, #tpu.memory_space<vmem>>, vector<16x16xf32>
    %c0_1 = arith.constant 0 : index
    %c0_2 = arith.constant 0 : index
    %1 = vector.load %arg2[%c0_1, %c0_2] : memref<16x32xf32, #tpu.memory_space<vmem>>, vector<16x32xf32>
    %cst = arith.constant dense<0.000000e+00> : vector<16x32xf32>
    %2 = tpu.matmul %0, %1, %cst {dimension_numbers = #tpu.dot_dimension_numbers<[1], [0], [0], [1], [0, 0, 1, 1], [], []>} : vector<16x16xf32>, vector<16x32xf32>, vector<16x32xf32> -> vector<16x32xf32>
    %c0_3 = arith.constant 0 : index
    %c0_4 = arith.constant 0 : index
    %3 = vector.load %arg3[%c0_3, %c0_4] : memref<1x32xf32, #tpu.memory_space<vmem>>, vector<1x32xf32>
    %4 = vector.broadcast %3 : vector<1x32xf32> to vector<16x32xf32>
    %5 = arith.addf %2, %4 : vector<16x32xf32>
    %cst_5 = arith.constant 0.000000e+00 : f32
    %6 = vector.broadcast %cst_5 : f32 to vector<16x32xf32>
    %7 = arith.maximumf %5, %6 : vector<16x32xf32>
    %c0_6 = arith.constant 0 : index
    %c0_7 = arith.constant 0 : index
    %8 = vector.load %arg4[%c0_6, %c0_7] : memref<32x32xf32, #tpu.memory_space<vmem>>, vector<32x32xf32>
    %cst_8 = arith.constant dense<0.000000e+00> : vector<16x32xf32>
    %9 = tpu.matmul %7, %8, %cst_8 {dimension_numbers = #tpu.dot_dimension_numbers<[1], [0], [0], [1], [0, 0, 1, 1], [], []>} : vector<16x32xf32>, vector<32x32xf32>, vector<16x32xf32> -> vector<16x32xf32>
    %c0_9 = arith.constant 0 : index
    %c0_10 = arith.constant 0 : index
    %10 = vector.load %arg5[%c0_9, %c0_10] : memref<1x32xf32, #tpu.memory_space<vmem>>, vector<1x32xf32>
    %11 = vector.broadcast %10 : vector<1x32xf32> to vector<16x32xf32>
    %12 = arith.addf %9, %11 : vector<16x32xf32>
    %cst_11 = arith.constant 0.000000e+00 : f32
    %13 = vector.broadcast %cst_11 : f32 to vector<16x32xf32>
    %14 = arith.maximumf %12, %13 : vector<16x32xf32>
    %c0_12 = arith.constant 0 : index
    %c0_13 = arith.constant 0 : index
    %15 = vector.load %arg6[%c0_12, %c0_13] : memref<32x8xf32, #tpu.memory_space<vmem>>, vector<32x8xf32>
    %cst_14 = arith.constant dense<0.000000e+00> : vector<16x8xf32>
    %16 = tpu.matmul %14, %15, %cst_14 {dimension_numbers = #tpu.dot_dimension_numbers<[1], [0], [0], [1], [0, 0, 1, 1], [], []>} : vector<16x32xf32>, vector<32x8xf32>, vector<16x8xf32> -> vector<16x8xf32>
    %c0_15 = arith.constant 0 : index
    %c0_16 = arith.constant 0 : index
    %17 = vector.load %arg7[%c0_15, %c0_16] : memref<1x8xf32, #tpu.memory_space<vmem>>, vector<1x8xf32>
    %18 = vector.broadcast %17 : vector<1x8xf32> to vector<16x8xf32>
    %19 = arith.addf %16, %18 : vector<16x8xf32>
    %c0_17 = arith.constant 0 : index
    %c0_18 = arith.constant 0 : index
    %20 = vector.load %arg8[%c0_17, %c0_18] : memref<16x8xf32, #tpu.memory_space<vmem>>, vector<16x8xf32>
    tpu.vector_store %arg8[%c0_17, %c0_18], %19 {strides = array<i32>} : memref<16x8xf32, #tpu.memory_space<vmem>>, vector<16x8xf32>,
    return
  }
  func.func @transform_0(%arg0: i32) -> (i32, i32) {
    %c0_i32 = arith.constant 0 : i32
    %c0_i32_0 = arith.constant 0 : i32
    return %arg0, %c0_i32 : i32, i32
  }
  func.func @transform_1(%arg0: i32) -> (i32, i32) {
    %c0_i32 = arith.constant 0 : i32
    %c0_i32_0 = arith.constant 0 : i32
    %c0_i32_1 = arith.constant 0 : i32
    return %c0_i32, %c0_i32_0 : i32, i32
  }
  func.func @transform_2(%arg0: i32) -> (i32, i32) {
    %c0_i32 = arith.constant 0 : i32
    %c0_i32_0 = arith.constant 0 : i32
    %c0_i32_1 = arith.constant 0 : i32
    return %c0_i32, %c0_i32_0 : i32, i32
  }
  func.func @transform_3(%arg0: i32) -> (i32, i32) {
    %c0_i32 = arith.constant 0 : i32
    %c0_i32_0 = arith.constant 0 : i32
    %c0_i32_1 = arith.constant 0 : i32
    return %c0_i32, %c0_i32_0 : i32, i32
  }
  func.func @transform_4(%arg0: i32) -> (i32, i32) {
    %c0_i32 = arith.constant 0 : i32
    %c0_i32_0 = arith.constant 0 : i32
    %c0_i32_1 = arith.constant 0 : i32
    return %c0_i32, %c0_i32_0 : i32, i32
  }
  func.func @transform_5(%arg0: i32) -> (i32, i32) {
    %c0_i32 = arith.constant 0 : i32
    %c0_i32_0 = arith.constant 0 : i32
    %c0_i32_1 = arith.constant 0 : i32
    return %c0_i32, %c0_i32_0 : i32, i32
  }
  func.func @transform_6(%arg0: i32) -> (i32, i32) {
    %c0_i32 = arith.constant 0 : i32
    %c0_i32_0 = arith.constant 0 : i32
    %c0_i32_1 = arith.constant 0 : i32
    return %c0_i32, %c0_i32_0 : i32, i32
  }
  func.func @transform_7(%arg0: i32) -> (i32, i32) {
    %c0_i32 = arith.constant 0 : i32
    %c0_i32_0 = arith.constant 0 : i32
    return %arg0, %c0_i32 : i32, i32
  }
}

</mosaic_0001>

<bundles_post_ra>
// kernel: tpu_custom_call.1
= control target key start
LH: loop header
LB: loop body
LE: loop exit
PB: predicated region body
PF: predicated region fallthrough
CT: control target
= control target key end

     0   :  { %s744_s24 = smov 0   ;;  %s811_s0 = inlined_call_operand.vmem [shape: f32[32,16], index: 0, kind: input, shape index: {}]   ;;  %s812_s1 = inlined_call_operand.vmem [shape: f32[16,32], index: 1, kind: input, shape index: {}]   ;;  %s813_s2 = inlined_call_operand.vmem [shape: f32[1,32], index: 2, kind: input, shape index: {}]   ;;  %s814_s3 = inlined_call_operand.vmem [shape: f32[32,32], index: 3, kind: input, shape index: {}]   ;;  %s815_s4 = inlined_call_operand.vmem [shape: f32[1,32], index: 4, kind: input, shape index: {}]   ;;  %s816_s5 = inlined_call_operand.vmem [shape: f32[32,8], index: 5, kind: input, shape index: {}]   ;;  %s817_s6 = inlined_call_operand.vmem [shape: f32[1,8], index: 6, kind: input, shape index: {}]   ;;  %s818_s7 = inlined_call_operand.vmem [shape: f32[32,8], index: 7, kind: output, shape index: {}]  }
   0x1 LB: > { %s623_s25 = sadd.s32 4294967295, %s702_s24   ;;  %p627_p0 = scmp.ge.s32.totalorder %s702_s24, 1  ;;  %s702_s24 = sphi %s744_s24, %s17_s24  }
   0x2   : > { %p238_p1 = scmp.lt.s32.totalorder %s702_s24, 3 }
   0x4   : > { %p239_p2 = pnand %p627_p0, %p238_p1 }
   0x5   : > { %s628_s30 = sshll.u32 (!%p239_p2), %s623_s25, 1 }
   0x6   : > { %242 = sbr.rel (%p239_p2) target bundleno = 614 (0x266), region = 48  ;;  %p271_p3 = scmp.lt.s32.totalorder (!%p239_p2), %s628_s30, 3 }
   0xb   : > { %v285_v0 = vld [vmem:[%s812_s1 + $0x8] sm:$0xff]  ;;  %v284_v1 = vld [vmem:[%s812_s1] sm:$0xff]  ;;  %s820_s30 = smov (!%p271_p3, %s628_s30), 3  ;;  %vm293_vm0 = vcmask 130048   ;;  %v380_v4 = vld [vmem:[%s814_s3 + $0x18] sm:$0xff]  ;;  %vm388_vm1 = vcmask 261120  }
   0xc   : > { %659 = vmatprep.subr.mxu0 %v285_v0  ;;  %s629_s8 = sshll.u32 %s820_s30, 3  ;;  %666 = vmatprep.subr.mxu1 %v380_v4  ;;  %v379_v5 = vld [vmem:[%s814_s3 + $0x10] sm:$0xff]  ;;  %v378_v6 = vld [vmem:[%s814_s3 + $0x8] sm:$0xff]  ;;  %v377_v7 = vld [vmem:[%s814_s3] sm:$0xff]  ;;  %vm564_vm2 = vcmask 64512  }
   0xd   : > { %660 = vmatpush3.msra.mxu0 %v285_v0  ;;  %s274_s11 = scalar_lea.vmem %s811_s0, %s629_s8  ;;  %667 = vmatpush3.msra.mxu1 %v380_v4  ;;  %v632_v8 = vld [vmem:[%s813_s2] ss:$0 sm:$0xff]  ;;  %v475_v15 = vld [vmem:[%s816_s5 + $0x18] sm:$0xff]  ;;  %v474_v16 = vld [vmem:[%s816_s5 + $0x10] sm:$0xff]  ;;  %s280_s16 = scalar_lea.vmem %s818_s7, %s629_s8 }
   0xe   : > { %661 = vmatprep.subr.mxu0 %v284_v1  ;;  %v282_v2 = vld [vmem:[%s274_s11] sm:$0xff]  ;;  %v283_v3 = vld [vmem:[%s274_s11 + $0x8] sm:$0xff]  ;;  %668 = vmatprep.subr.mxu1 %v379_v5 }
   0xf   : > { %662 = vmatpush3.msra.mxu0 %v284_v1  ;;  %663 = vmatprep.mubr.msk.f32.mxu0 %vm293_vm0, %v282_v2  ;;  %v473_v17 = vld [vmem:[%s816_s5 + $0x8] sm:$0xff]  ;;  %v472_v18 = vld [vmem:[%s816_s5] sm:$0xff] }
  0x10   : > { %664 = vmatmul.mubr.msk.f32.vlgmr.msra.gmra.mxu0 %vm293_vm0, %v283_v3  ;;  %669 = vmatpush3.msra.mxu1 %v379_v5  ;;  %v635_v19 = vld [vmem:[%s815_s4] ss:$0 sm:$0xff] }
  0x11   : > { %670 = vmatprep.subr.mxu1 %v378_v6  ;;  %677 = vmatprep.subr.mxu0 %v475_v15  ;;  %v638_v27 = vld [vmem:[%s817_s6] ss:$0 sm:$0xff] }
  0x12   : > { %671 = vmatpush3.msra.mxu1 %v378_v6  ;;  %678 = vmatpush3.msra.mxu0 %v475_v15 }
  0x13   : > { %672 = vmatprep.subr.mxu1 %v377_v7  ;;  %679 = vmatprep.subr.mxu0 %v474_v16 }
  0x14   : > { %673 = vmatpush3.msra.mxu1 %v377_v7  ;;  %680 = vmatpush3.msra.mxu0 %v474_v16 }
  0x15   : > { %681 = vmatprep.subr.mxu0 %v473_v17 }
  0x16   : > { %682 = vmatpush3.msra.mxu0 %v473_v17 }
  0x17   : > { %683 = vmatprep.subr.mxu0 %v472_v18 }
  0x18   : > { %684 = vmatpush3.msra.mxu0 %v472_v18 }
  0xd0   : > { %v665_v9 = vpop.f32.mrf.mxu0 }
  0xd1   : > { %v372_v10 = vadd.f32 %v665_v9, %v632_v8 }
  0xd2   : > { %v366_v11 = vpop.f32.mrf.mxu0 }
  0xd3   : > { %v367_v12 = vadd.f32 %v632_v8, %v366_v11  ;;  %v376_v14 = vmax.f32 %v372_v10, 0.0 }
  0xd5   : > { %v375_v13 = vmax.f32 %v367_v12, 0.0 }
  0xd7   : > { %674 = vmatprep.mubr.msk.f32.mxu1 %vm388_vm1, %v375_v13 }
  0xd8   : > { %675 = vmatmul.mubr.msk.f32.vlgmr.msra.gmra.mxu1 %vm388_vm1, %v376_v14 }
 0x198   : > { %v676_v20 = vpop.f32.mrf.mxu1 }
 0x199   : > { %v467_v21 = vadd.f32 %v676_v20, %v635_v19 }
 0x19a   : > { %v461_v22 = vpop.f32.mrf.mxu1 }
 0x19b   : > { %v462_v23 = vadd.f32 %v635_v19, %v461_v22  ;;  %v471_v25 = vmax.f32 %v467_v21, 0.0 }
 0x19d   : > { %v470_v24 = vmax.f32 %v462_v23, 0.0 }
 0x19f   : > { %685 = vmatprep.mubr.msk.f32.mxu0 %vm388_vm1, %v470_v24 }
 0x1a0   : > { %686 = vmatmul.mubr.msk.f32.vlgmr.msra.gmra.mxu0 %vm388_vm1, %v471_v25 }
 0x260   : > { %v687_v26 = vpop.f32.mrf.mxu0 }
 0x261   : > { %v561_v30 = vadd.f32 %v687_v26, %v638_v27 }
 0x262   : > { %v555_v28 = vpop.f32.mrf.mxu0 }
 0x263   : > { %v556_v29 = vadd.f32 %v638_v27, %v555_v28  ;;  %566 = vst.msk [vmem:[%s280_s16 + $0x8] sm:$0xff] %vm564_vm2, %v561_v30 }
 0x265   : > { %565 = vst.msk [vmem:[%s280_s16] sm:$0xff] %vm564_vm2, %v556_v29 }
 0x266 PF: > { %s17_s24 = sadd.s32 1, %s702_s24  }
 0x267   : > { %p14_p4 = scmp.ge.s32.totalorder %s17_s24, 4  }
 0x269   :  { %16 = sbr.rel (!%p14_p4) target bundleno = 1 (0x1), region = 78 }

</bundles_post_ra>
